<compile_context>
chip_gen: v7x
topology: tpu7x:2x2x1
jax: 0.10.0
libtpu: 0.0.40
codegen_flags: <defaults>
</compile_context>

<pallas_src>
import functools

import jax
import jax.numpy as jnp
from jax import lax
from jax.experimental import pallas as pl
from jax.experimental.pallas import tpu as pltpu


def _temporal_block_kernel(x_ref, w1_ref, b1_ref, w2_ref, b2_ref, *rest,
                           K, dilation, TL, pad, CR, has_downsample):
  """One (batch n, time-tile t) step.

  x_ref  : (TL, Cin_p)         bf16 current time tile (no halo, no overlap)
  w1_ref : (K, Cin_p, Cout_p)  bf16 conv1 weight, tap-major
  b1_ref : (1, Cout_p)         f32
  w2_ref : (K, Cout_p, Cout_p) bf16 conv2 weight, tap-major
  b2_ref : (1, Cout_p)         f32
  [wd_ref: (Cin_p, Cout_p) bf16, bd_ref: (1, Cout_p) f32]   if downsample
  out_ref: (TL, Cout_p)        bf16
  xbuf   : (CR+TL, Cin_p)      bf16 scratch; rows [0,CR) carry prev tile's x
  h1buf  : (CR+TL, Cout_p)     bf16 scratch; rows [0,CR) carry prev tile's h1
  """
  if has_downsample:
    wd_ref, bd_ref, out_ref, xbuf, h1buf = rest
  else:
    out_ref, xbuf, h1buf = rest

  t = pl.program_id(1)
  off = CR - pad                       # first live row of the carry region

  # New batch row: carry region holds the causal zero padding.
  @pl.when(t == 0)
  def _init():
    xbuf[pl.ds(0, CR), :] = jnp.zeros((CR, xbuf.shape[1]), xbuf.dtype)
    h1buf[pl.ds(0, CR), :] = jnp.zeros((CR, h1buf.shape[1]), h1buf.dtype)

  x_tile = x_ref[...]                                  # (TL, Cin_p) bf16
  xbuf[pl.ds(CR, TL), :] = x_tile

  # ---- conv1 (K shifted MXU matmuls) + bias + relu ----
  acc = jnp.dot(xbuf[pl.ds(off, TL), :], w1_ref[0],
                preferred_element_type=jnp.float32)
  for k in range(1, K):
    acc = acc + jnp.dot(xbuf[pl.ds(off + k * dilation, TL), :], w1_ref[k],
                        preferred_element_type=jnp.float32)
  h1 = jnp.maximum(acc + b1_ref[...], 0.0)             # dropout1 == identity
  h1buf[pl.ds(CR, TL), :] = h1.astype(h1buf.dtype)

  # ---- conv2 + bias + relu ----
  acc2 = jnp.dot(h1buf[pl.ds(off, TL), :], w2_ref[0],
                 preferred_element_type=jnp.float32)
  for k in range(1, K):
    acc2 = acc2 + jnp.dot(h1buf[pl.ds(off + k * dilation, TL), :], w2_ref[k],
                          preferred_element_type=jnp.float32)
  h2 = jnp.maximum(acc2 + b2_ref[...], 0.0)            # dropout2 == identity

  # ---- residual (1x1 downsample or identity) + final relu ----
  if has_downsample:
    res = jnp.dot(x_tile, wd_ref[...], preferred_element_type=jnp.float32)
    res = res + bd_ref[...]
  else:
    res = x_tile.astype(jnp.float32)
  out_ref[...] = jnp.maximum(h2 + res, 0.0).astype(out_ref.dtype)

  # Carry the last CR (>= pad) rows of x / h1 forward for the next time tile.
  @pl.when(t + 1 < pl.num_programs(1))
  def _carry():
    xbuf[pl.ds(0, CR), :] = xbuf[pl.ds(TL, CR), :]
    h1buf[pl.ds(0, CR), :] = h1buf[pl.ds(TL, CR), :]


def _round_up(x, m):
  return ((x + m - 1) // m) * m


def _vmem_capacity_bytes():
  try:
    cap = int(getattr(pltpu.get_tpu_info(), "vmem_capacity_bytes", 0))
    if cap > 0:
      return cap
  except Exception:
    pass
  return 64 * 1024 * 1024        # conservative default (v7x per-TensorCore)


def _pick_time_tile(requested, L, K, Cin_p, Cout_p, CR, budget_bytes):
  """Largest sublane-aligned tile <= requested that fits the VMEM budget and
  is >= the carried-row count CR (carry must come from the previous tile)."""
  min_tl = max(8, CR)
  tl = max(min_tl, min(_round_up(requested, 8), _round_up(L, 8)))
  # Constant-index weight/bias blocks (double-buffered by the pipeline).
  w_bytes = 2 * 2 * (K * Cin_p * Cout_p + K * Cout_p * Cout_p
                     + Cin_p * Cout_p + 3 * Cout_p)

  def est(t):
    return (2 * t * Cin_p * 2            # x block, bf16, double buffered
            + 2 * t * Cout_p * 2         # out block, bf16, double buffered
            + (CR + t) * Cin_p * 2       # xbuf scratch
            + (CR + t) * Cout_p * 2      # h1buf scratch
            + 4 * t * Cout_p * 4         # f32 accumulators / h2 / res temps
            + 2 * t * Cin_p * 4          # per-tap shifted-slice temporaries
            + w_bytes)

  while tl > min_tl and est(tl) > budget_bytes:
    tl = max(min_tl, _round_up(tl // 2, 8))
  return tl


def temporal_block_forward(x_ncl, w1, b1, w2, b2, wd=None, bd=None, *,
                           kernel_size, dilation, padding, time_tile=1024,
                           out_dtype=jnp.bfloat16):
  """TemporalBlock forward.  x_ncl: (N, Cin, L); PyTorch-layout weights.

  w1: (Cout, Cin, K)  b1: (Cout,)   w2: (Cout, Cout, K)  b2: (Cout,)
  wd: (Cout, Cin, 1) or None        bd: (Cout,) or None
  Returns (N, Cout, L) in `out_dtype`.
  """
  N, Cin, L = x_ncl.shape
  Cout = w1.shape[0]
  K, d, p = kernel_size, dilation, padding
  assert p == d * (K - 1) and p > 0, "standard causal TCN padding required"
  has_ds = wd is not None
  if not has_ds:
    assert Cin == Cout, "residual add needs Cin == Cout without downsample"

  Cin_p = _round_up(Cin, 128)          # lane-dense channel padding
  Cout_p = _round_up(Cout, 128)
  CR = _round_up(p, 8)                 # carried rows, sublane aligned

  cap = _vmem_capacity_bytes()
  TL = _pick_time_tile(time_tile, L, K, Cin_p, Cout_p, CR,
                       budget_bytes=int(0.6 * cap))
  T = (L + TL - 1) // TL
  Lt = T * TL

  # ---- layout glue (plain JAX): NCL->NLC, bf16, pad channels + tail time ----
  x_nlc = jnp.transpose(x_ncl, (0, 2, 1)).astype(jnp.bfloat16)
  x_nlc = jnp.pad(x_nlc, ((0, 0), (0, Lt - L), (0, Cin_p - Cin)))

  def prep_w(w, ci_p, co_p):           # (Co,Ci,K) -> (K,Ci_p,Co_p) bf16
    wt = jnp.transpose(w, (2, 1, 0))
    wt = jnp.pad(wt, ((0, 0), (0, ci_p - wt.shape[1]), (0, co_p - wt.shape[2])))
    return wt.astype(jnp.bfloat16)

  def prep_b(b, co_p):
    return jnp.pad(b, (0, co_p - b.shape[0])).reshape(1, co_p).astype(jnp.float32)

  args = [x_nlc, prep_w(w1, Cin_p, Cout_p), prep_b(b1, Cout_p),
          prep_w(w2, Cout_p, Cout_p), prep_b(b2, Cout_p)]
  in_specs = [
      pl.BlockSpec((None, TL, Cin_p), lambda n, t: (n, t, 0)),
      pl.BlockSpec((K, Cin_p, Cout_p), lambda n, t: (0, 0, 0)),
      pl.BlockSpec((1, Cout_p), lambda n, t: (0, 0)),
      pl.BlockSpec((K, Cout_p, Cout_p), lambda n, t: (0, 0, 0)),
      pl.BlockSpec((1, Cout_p), lambda n, t: (0, 0)),
  ]
  if has_ds:
    wd_p = jnp.pad(jnp.transpose(wd[:, :, 0], (1, 0)),
                   ((0, Cin_p - Cin), (0, Cout_p - Cout))).astype(jnp.bfloat16)
    args += [wd_p, prep_b(bd, Cout_p)]
    in_specs += [pl.BlockSpec((Cin_p, Cout_p), lambda n, t: (0, 0)),
                 pl.BlockSpec((1, Cout_p), lambda n, t: (0, 0))]

  kernel = functools.partial(_temporal_block_kernel, K=K, dilation=d, TL=TL,
                             pad=p, CR=CR, has_downsample=has_ds)

  out_nlc = pl.pallas_call(
      kernel,
      out_shape=jax.ShapeDtypeStruct((N, Lt, Cout_p), jnp.bfloat16),
      grid_spec=pltpu.PrefetchScalarGridSpec(
          num_scalar_prefetch=0,
          grid=(N, T),
          in_specs=in_specs,
          out_specs=pl.BlockSpec((None, TL, Cout_p), lambda n, t: (n, t, 0)),
          scratch_shapes=[pltpu.VMEM((CR + TL, Cin_p), jnp.bfloat16),
                          pltpu.VMEM((CR + TL, Cout_p), jnp.bfloat16)]),
      compiler_params=pltpu.CompilerParams(
          # time axis carries x/h1 halo in scratch -> must be sequential.
          dimension_semantics=("parallel", "arbitrary"),
          vmem_limit_bytes=int(0.85 * cap)),
  )(*args)

  # Fold the :L/:Cout slice into the single NLC->NCL transpose pass.
  # (Stacked TCN layers should keep NLC between blocks and skip this.)
  return jnp.transpose(out_nlc[:, :L, :Cout], (0, 2, 1)).astype(out_dtype)


def temporal_block_reference(x_ncl, w1, b1, w2, b2, wd=None, bd=None, *,
                             dilation, padding):
  """Pure-JAX f32 reference mirroring the PyTorch module (NCL layout)."""
  dn = ("NCH", "OIH", "NCH")

  def conv(x, w, b, dil, pad):
    y = lax.conv_general_dilated(x, w, window_strides=(1,),
                                 padding=[(pad, pad)], rhs_dilation=(dil,),
                                 dimension_numbers=dn)
    return y + b[None, :, None]

  h = conv(x_ncl, w1, b1, dilation, padding)
  h = jnp.maximum(h[:, :, :-padding], 0.0)            # chomp1 + relu1
  h = conv(h, w2, b2, dilation, padding)
  h = jnp.maximum(h[:, :, :-padding], 0.0)            # chomp2 + relu2
  res = x_ncl if wd is None else conv(x_ncl, wd, bd, 1, 0)
  return jnp.maximum(h + res, 0.0)


if __name__ == "__main__":
  master_key = jax.random.PRNGKey(0)

  def run_case(case_key, N, Cin, Cout, L, K, dilation, time_tile):
    padding = dilation * (K - 1)
    kx, k1, k2, kd, kb1, kb2, kbd = jax.random.split(case_key, 7)
    x = jax.random.normal(kx, (N, Cin, L), jnp.float32)
    w1 = 0.01 * jax.random.normal(k1, (Cout, Cin, K), jnp.float32)
    w2 = 0.01 * jax.random.normal(k2, (Cout, Cout, K), jnp.float32)
    b1 = 0.1 * jax.random.normal(kb1, (Cout,), jnp.float32)
    b2 = 0.1 * jax.random.normal(kb2, (Cout,), jnp.float32)
    if Cin != Cout:
      wd = 0.01 * jax.random.normal(kd, (Cout, Cin, 1), jnp.float32)
      bd = 0.1 * jax.random.normal(kbd, (Cout,), jnp.float32)
    else:
      wd = bd = None   # PyTorch module has no downsample in this case

    out = temporal_block_forward(x, w1, b1, w2, b2, wd, bd,
                                 kernel_size=K, dilation=dilation,
                                 padding=padding, time_tile=time_tile,
                                 out_dtype=jnp.float32)
    out = jax.block_until_ready(out)
    ref = temporal_block_reference(x, w1, b1, w2, b2, wd, bd,
                                   dilation=dilation, padding=padding)
    assert out.shape == (N, Cout, L)
    err = float(jnp.max(jnp.abs(out - ref)))
    # bf16 matmul inputs / residual / output vs f32 reference -> loose tol.
    assert err < 5e-2, err

  kc1, kc2 = jax.random.split(master_key)
  # Downsample path (Cin != Cout), multiple time tiles + ragged tail + carry.
  run_case(kc1, N=2, Cin=4, Cout=8, L=40, K=3, dilation=2, time_tile=16)
  # Identity-residual path (Cin == Cout), single tile.
  run_case(kc2, N=2, Cin=8, Cout=8, L=24, K=3, dilation=2, time_tile=64)

  print("KERNEL_OK")
</pallas_src>

<mosaic_0001>
module attributes {stable_mosaic.version = 11 : i64} {
  func.func @_temporal_block_kernel(%arg0: i32, %arg1: i32, %arg2: memref<1x16x128xbf16, #tpu.memory_space<vmem>>, %arg3: memref<3x128x128xbf16, #tpu.memory_space<vmem>>, %arg4: memref<1x128xf32, #tpu.memory_space<vmem>>, %arg5: memref<3x128x128xbf16, #tpu.memory_space<vmem>>, %arg6: memref<1x128xf32, #tpu.memory_space<vmem>>, %arg7: memref<128x128xbf16, #tpu.memory_space<vmem>>, %arg8: memref<1x128xf32, #tpu.memory_space<vmem>>, %arg9: memref<1x16x128xbf16, #tpu.memory_space<vmem>>, %arg10: memref<24x128xbf16, #tpu.memory_space<vmem>>, %arg11: memref<24x128xbf16, #tpu.memory_space<vmem>>) attributes {dimension_semantics = [#tpu.dimension_semantics<parallel>, #tpu.dimension_semantics<arbitrary>], iteration_bounds = array<i64: 2, 3>, scalar_prefetch = 0 : i64, scratch_operands = 2 : i64, tpu.core_type = #tpu.core_type<tc>, window_params = [{transform_indices = @transform_0, window_bounds = array<i64: 1, 16, 128>}, {pipeline_mode = #tpu.pipeline_mode<synchronous>, transform_indices = @transform_1, window_bounds = array<i64: 3, 128, 128>}, {pipeline_mode = #tpu.pipeline_mode<synchronous>, transform_indices = @transform_2, window_bounds = array<i64: 1, 128>}, {pipeline_mode = #tpu.pipeline_mode<synchronous>, transform_indices = @transform_3, window_bounds = array<i64: 3, 128, 128>}, {pipeline_mode = #tpu.pipeline_mode<synchronous>, transform_indices = @transform_4, window_bounds = array<i64: 1, 128>}, {pipeline_mode = #tpu.pipeline_mode<synchronous>, transform_indices = @transform_5, window_bounds = array<i64: 128, 128>}, {pipeline_mode = #tpu.pipeline_mode<synchronous>, transform_indices = @transform_6, window_bounds = array<i64: 1, 128>}, {transform_indices = @transform_7, window_bounds = array<i64: 1, 16, 128>}]} {
    %c0_i32 = arith.constant 0 : i32
    %0 = arith.cmpi eq, %arg1, %c0_i32 : i32
    %1 = arith.extui %0 : i1 to i32
    %c0_i32_0 = arith.constant 0 : i32
    %2 = arith.cmpi ne, %1, %c0_i32_0 : i32
    scf.if %2 {
      %cst_53 = arith.constant 0.000000e+00 : bf16
      %62 = vector.broadcast %cst_53 : bf16 to vector<8x128xbf16>
      %c0_54 = arith.constant 0 : index
      %c0_55 = arith.constant 0 : index
      %63 = vector.load %arg10[%c0_54, %c0_55] : memref<24x128xbf16, #tpu.memory_space<vmem>>, vector<8x128xbf16>
      tpu.vector_store %arg10[%c0_54, %c0_55], %62 {strides = array<i32>} : memref<24x128xbf16, #tpu.memory_space<vmem>>, vector<8x128xbf16>,
      %cst_56 = arith.constant 0.000000e+00 : bf16
      %64 = vector.broadcast %cst_56 : bf16 to vector<8x128xbf16>
      %c0_57 = arith.constant 0 : index
      %c0_58 = arith.constant 0 : index
      %65 = vector.load %arg11[%c0_57, %c0_58] : memref<24x128xbf16, #tpu.memory_space<vmem>>, vector<8x128xbf16>
      tpu.vector_store %arg11[%c0_57, %c0_58], %64 {strides = array<i32>} : memref<24x128xbf16, #tpu.memory_space<vmem>>, vector<8x128xbf16>,
    } else {
    }
    %c0 = arith.constant 0 : index
    %c0_1 = arith.constant 0 : index
    %c0_2 = arith.constant 0 : index
    %3 = vector.load %arg2[%c0, %c0_1, %c0_2] : memref<1x16x128xbf16, #tpu.memory_space<vmem>>, vector<1x16x128xbf16>
    %4 = vector.shape_cast %3 : vector<1x16x128xbf16> to vector<16x128xbf16>
    %c8 = arith.constant 8 : index
    %c0_3 = arith.constant 0 : index
    %5 = vector.load %arg10[%c8, %c0_3] : memref<24x128xbf16, #tpu.memory_space<vmem>>, vector<16x128xbf16>
    tpu.vector_store %arg10[%c8, %c0_3], %4 {strides = array<i32>} : memref<24x128xbf16, #tpu.memory_space<vmem>>, vector<16x128xbf16>,
    %c4 = arith.constant 4 : index
    %c0_4 = arith.constant 0 : index
    %6 = vector.load %arg10[%c4, %c0_4] : memref<24x128xbf16, #tpu.memory_space<vmem>>, vector<16x128xbf16>
    %c0_5 = arith.constant 0 : index
    %c0_6 = arith.constant 0 : index
    %c0_7 = arith.constant 0 : index
    %7 = vector.load %arg3[%c0_5, %c0_6, %c0_7] : memref<3x128x128xbf16, #tpu.memory_space<vmem>>, vector<1x128x128xbf16>
    %8 = vector.shape_cast %7 : vector<1x128x128xbf16> to vector<128x128xbf16>
    %cst = arith.constant dense<0.000000e+00> : vector<16x128xf32>
    %9 = tpu.matmul %6, %8, %cst {dimension_numbers = #tpu.dot_dimension_numbers<[1], [0], [0], [1], [0, 0, 1, 1], [], []>} : vector<16x128xbf16>, vector<128x128xbf16>, vector<16x128xf32> -> vector<16x128xf32>
    %c6 = arith.constant 6 : index
    %c0_8 = arith.constant 0 : index
    %10 = vector.load %arg10[%c6, %c0_8] : memref<24x128xbf16, #tpu.memory_space<vmem>>, vector<16x128xbf16>
    %c1 = arith.constant 1 : index
    %c0_9 = arith.constant 0 : index
    %c0_10 = arith.constant 0 : index
    %11 = vector.load %arg3[%c1, %c0_9, %c0_10] : memref<3x128x128xbf16, #tpu.memory_space<vmem>>, vector<1x128x128xbf16>
    %12 = vector.shape_cast %11 : vector<1x128x128xbf16> to vector<128x128xbf16>
    %cst_11 = arith.constant dense<0.000000e+00> : vector<16x128xf32>
    %13 = tpu.matmul %10, %12, %cst_11 {dimension_numbers = #tpu.dot_dimension_numbers<[1], [0], [0], [1], [0, 0, 1, 1], [], []>} : vector<16x128xbf16>, vector<128x128xbf16>, vector<16x128xf32> -> vector<16x128xf32>
    %14 = arith.addf %9, %13 : vector<16x128xf32>
    %c8_12 = arith.constant 8 : index
    %c0_13 = arith.constant 0 : index
    %15 = vector.load %arg10[%c8_12, %c0_13] : memref<24x128xbf16, #tpu.memory_space<vmem>>, vector<16x128xbf16>
    %c2 = arith.constant 2 : index
    %c0_14 = arith.constant 0 : index
    %c0_15 = arith.constant 0 : index
    %16 = vector.load %arg3[%c2, %c0_14, %c0_15] : memref<3x128x128xbf16, #tpu.memory_space<vmem>>, vector<1x128x128xbf16>
    %17 = vector.shape_cast %16 : vector<1x128x128xbf16> to vector<128x128xbf16>
    %cst_16 = arith.constant dense<0.000000e+00> : vector<16x128xf32>
    %18 = tpu.matmul %15, %17, %cst_16 {dimension_numbers = #tpu.dot_dimension_numbers<[1], [0], [0], [1], [0, 0, 1, 1], [], []>} : vector<16x128xbf16>, vector<128x128xbf16>, vector<16x128xf32> -> vector<16x128xf32>
    %19 = arith.addf %14, %18 : vector<16x128xf32>
    %c0_17 = arith.constant 0 : index
    %c0_18 = arith.constant 0 : index
    %20 = vector.load %arg4[%c0_17, %c0_18] : memref<1x128xf32, #tpu.memory_space<vmem>>, vector<1x128xf32>
    %21 = vector.broadcast %20 : vector<1x128xf32> to vector<16x128xf32>
    %22 = arith.addf %19, %21 : vector<16x128xf32>
    %cst_19 = arith.constant 0.000000e+00 : f32
    %23 = vector.broadcast %cst_19 : f32 to vector<16x128xf32>
    %24 = arith.maximumf %22, %23 : vector<16x128xf32>
    %25 = arith.truncf %24 : vector<16x128xf32> to vector<16x128xbf16>
    %c8_20 = arith.constant 8 : index
    %c0_21 = arith.constant 0 : index
    %26 = vector.load %arg11[%c8_20, %c0_21] : memref<24x128xbf16, #tpu.memory_space<vmem>>, vector<16x128xbf16>
    tpu.vector_store %arg11[%c8_20, %c0_21], %25 {strides = array<i32>} : memref<24x128xbf16, #tpu.memory_space<vmem>>, vector<16x128xbf16>,
    %c4_22 = arith.constant 4 : index
    %c0_23 = arith.constant 0 : index
    %27 = vector.load %arg11[%c4_22, %c0_23] : memref<24x128xbf16, #tpu.memory_space<vmem>>, vector<16x128xbf16>
    %c0_24 = arith.constant 0 : index
    %c0_25 = arith.constant 0 : index
    %c0_26 = arith.constant 0 : index
    %28 = vector.load %arg5[%c0_24, %c0_25, %c0_26] : memref<3x128x128xbf16, #tpu.memory_space<vmem>>, vector<1x128x128xbf16>
    %29 = vector.shape_cast %28 : vector<1x128x128xbf16> to vector<128x128xbf16>
    %cst_27 = arith.constant dense<0.000000e+00> : vector<16x128xf32>
    %30 = tpu.matmul %27, %29, %cst_27 {dimension_numbers = #tpu.dot_dimension_numbers<[1], [0], [0], [1], [0, 0, 1, 1], [], []>} : vector<16x128xbf16>, vector<128x128xbf16>, vector<16x128xf32> -> vector<16x128xf32>
    %c6_28 = arith.constant 6 : index
    %c0_29 = arith.constant 0 : index
    %31 = vector.load %arg11[%c6_28, %c0_29] : memref<24x128xbf16, #tpu.memory_space<vmem>>, vector<16x128xbf16>
    %c1_30 = arith.constant 1 : index
    %c0_31 = arith.constant 0 : index
    %c0_32 = arith.constant 0 : index
    %32 = vector.load %arg5[%c1_30, %c0_31, %c0_32] : memref<3x128x128xbf16, #tpu.memory_space<vmem>>, vector<1x128x128xbf16>
    %33 = vector.shape_cast %32 : vector<1x128x128xbf16> to vector<128x128xbf16>
    %cst_33 = arith.constant dense<0.000000e+00> : vector<16x128xf32>
    %34 = tpu.matmul %31, %33, %cst_33 {dimension_numbers = #tpu.dot_dimension_numbers<[1], [0], [0], [1], [0, 0, 1, 1], [], []>} : vector<16x128xbf16>, vector<128x128xbf16>, vector<16x128xf32> -> vector<16x128xf32>
    %35 = arith.addf %30, %34 : vector<16x128xf32>
    %c8_34 = arith.constant 8 : index
    %c0_35 = arith.constant 0 : index
    %36 = vector.load %arg11[%c8_34, %c0_35] : memref<24x128xbf16, #tpu.memory_space<vmem>>, vector<16x128xbf16>
    %c2_36 = arith.constant 2 : index
    %c0_37 = arith.constant 0 : index
    %c0_38 = arith.constant 0 : index
    %37 = vector.load %arg5[%c2_36, %c0_37, %c0_38] : memref<3x128x128xbf16, #tpu.memory_space<vmem>>, vector<1x128x128xbf16>
    %38 = vector.shape_cast %37 : vector<1x128x128xbf16> to vector<128x128xbf16>
    %cst_39 = arith.constant dense<0.000000e+00> : vector<16x128xf32>
    %39 = tpu.matmul %36, %38, %cst_39 {dimension_numbers = #tpu.dot_dimension_numbers<[1], [0], [0], [1], [0, 0, 1, 1], [], []>} : vector<16x128xbf16>, vector<128x128xbf16>, vector<16x128xf32> -> vector<16x128xf32>
    %40 = arith.addf %35, %39 : vector<16x128xf32>
    %c0_40 = arith.constant 0 : index
    %c0_41 = arith.constant 0 : index
    %41 = vector.load %arg6[%c0_40, %c0_41] : memref<1x128xf32, #tpu.memory_space<vmem>>, vector<1x128xf32>
    %42 = vector.broadcast %41 : vector<1x128xf32> to vector<16x128xf32>
    %43 = arith.addf %40, %42 : vector<16x128xf32>
    %cst_42 = arith.constant 0.000000e+00 : f32
    %44 = vector.broadcast %cst_42 : f32 to vector<16x128xf32>
    %45 = arith.maximumf %43, %44 : vector<16x128xf32>
    %c0_43 = arith.constant 0 : index
    %c0_44 = arith.constant 0 : index
    %46 = vector.load %arg7[%c0_43, %c0_44] : memref<128x128xbf16, #tpu.memory_space<vmem>>, vector<128x128xbf16>
    %cst_45 = arith.constant dense<0.000000e+00> : vector<16x128xf32>
    %47 = tpu.matmul %4, %46, %cst_45 {dimension_numbers = #tpu.dot_dimension_numbers<[1], [0], [0], [1], [0, 0, 1, 1], [], []>} : vector<16x128xbf16>, vector<128x128xbf16>, vector<16x128xf32> -> vector<16x128xf32>
    %c0_46 = arith.constant 0 : index
    %c0_47 = arith.constant 0 : index
    %48 = vector.load %arg8[%c0_46, %c0_47] : memref<1x128xf32, #tpu.memory_space<vmem>>, vector<1x128xf32>
    %49 = vector.broadcast %48 : vector<1x128xf32> to vector<16x128xf32>
    %50 = arith.addf %47, %49 : vector<16x128xf32>
    %51 = arith.addf %45, %50 : vector<16x128xf32>
    %cst_48 = arith.constant 0.000000e+00 : f32
    %52 = vector.broadcast %cst_48 : f32 to vector<16x128xf32>
    %53 = arith.maximumf %51, %52 : vector<16x128xf32>
    %54 = arith.truncf %53 : vector<16x128xf32> to vector<16x128xbf16>
    %c0_49 = arith.constant 0 : index
    %c0_50 = arith.constant 0 : index
    %c0_51 = arith.constant 0 : index
    %55 = vector.load %arg9[%c0_49, %c0_50, %c0_51] : memref<1x16x128xbf16, #tpu.memory_space<vmem>>, vector<1x16x128xbf16>
    %56 = vector.shape_cast %55 : vector<1x16x128xbf16> to vector<16x128xbf16>
    %57 = vector.shape_cast %54 : vector<16x128xbf16> to vector<1x16x128xbf16>
    tpu.vector_store %arg9[%c0_49, %c0_50, %c0_51], %57 {strides = array<i32>} : memref<1x16x128xbf16, #tpu.memory_space<vmem>>, vector<1x16x128xbf16>,
    %c1_i32 = arith.constant 1 : i32
    %58 = arith.addi %arg1, %c1_i32 : i32
    %c3_i32 = arith.constant 3 : i32
    %59 = arith.cmpi slt, %58, %c3_i32 : i32
    %60 = arith.extui %59 : i1 to i32
    %c0_i32_52 = arith.constant 0 : i32
    %61 = arith.cmpi ne, %60, %c0_i32_52 : i32
    scf.if %61 {
      %c16 = arith.constant 16 : index
      %c0_53 = arith.constant 0 : index
      %62 = vector.load %arg10[%c16, %c0_53] : memref<24x128xbf16, #tpu.memory_space<vmem>>, vector<8x128xbf16>
      %c0_54 = arith.constant 0 : index
      %c0_55 = arith.constant 0 : index
      %63 = vector.load %arg10[%c0_54, %c0_55] : memref<24x128xbf16, #tpu.memory_space<vmem>>, vector<8x128xbf16>
      tpu.vector_store %arg10[%c0_54, %c0_55], %62 {strides = array<i32>} : memref<24x128xbf16, #tpu.memory_space<vmem>>, vector<8x128xbf16>,
      %c16_56 = arith.constant 16 : index
      %c0_57 = arith.constant 0 : index
      %64 = vector.load %arg11[%c16_56, %c0_57] : memref<24x128xbf16, #tpu.memory_space<vmem>>, vector<8x128xbf16>
      %c0_58 = arith.constant 0 : index
      %c0_59 = arith.constant 0 : index
      %65 = vector.load %arg11[%c0_58, %c0_59] : memref<24x128xbf16, #tpu.memory_space<vmem>>, vector<8x128xbf16>
      tpu.vector_store %arg11[%c0_58, %c0_59], %64 {strides = array<i32>} : memref<24x128xbf16, #tpu.memory_space<vmem>>, vector<8x128xbf16>,
    } else {
    }
    return
  }
  func.func @transform_0(%arg0: i32, %arg1: i32) -> (i32, i32, i32) {
    %c0_i32 = arith.constant 0 : i32
    %c0_i32_0 = arith.constant 0 : i32
    return %arg0, %arg1, %c0_i32 : i32, i32, i32
  }
  func.func @transform_1(%arg0: i32, %arg1: i32) -> (i32, i32, i32) {
    %c0_i32 = arith.constant 0 : i32
    %c0_i32_0 = arith.constant 0 : i32
    %c0_i32_1 = arith.constant 0 : i32
    %c0_i32_2 = arith.constant 0 : i32
    return %c0_i32, %c0_i32_0, %c0_i32_1 : i32, i32, i32
  }
  func.func @transform_2(%arg0: i32, %arg1: i32) -> (i32, i32) {
    %c0_i32 = arith.constant 0 : i32
    %c0_i32_0 = arith.constant 0 : i32
    %c0_i32_1 = arith.constant 0 : i32
    return %c0_i32, %c0_i32_0 : i32, i32
  }
  func.func @transform_3(%arg0: i32, %arg1: i32) -> (i32, i32, i32) {
    %c0_i32 = arith.constant 0 : i32
    %c0_i32_0 = arith.constant 0 : i32
    %c0_i32_1 = arith.constant 0 : i32
    %c0_i32_2 = arith.constant 0 : i32
    return %c0_i32, %c0_i32_0, %c0_i32_1 : i32, i32, i32
  }
  func.func @transform_4(%arg0: i32, %arg1: i32) -> (i32, i32) {
    %c0_i32 = arith.constant 0 : i32
    %c0_i32_0 = arith.constant 0 : i32
    %c0_i32_1 = arith.constant 0 : i32
    return %c0_i32, %c0_i32_0 : i32, i32
  }
  func.func @transform_5(%arg0: i32, %arg1: i32) -> (i32, i32) {
    %c0_i32 = arith.constant 0 : i32
    %c0_i32_0 = arith.constant 0 : i32
    %c0_i32_1 = arith.constant 0 : i32
    return %c0_i32, %c0_i32_0 : i32, i32
  }
  func.func @transform_6(%arg0: i32, %arg1: i32) -> (i32, i32) {
    %c0_i32 = arith.constant 0 : i32
    %c0_i32_0 = arith.constant 0 : i32
    %c0_i32_1 = arith.constant 0 : i32
    return %c0_i32, %c0_i32_0 : i32, i32
  }
  func.func @transform_7(%arg0: i32, %arg1: i32) -> (i32, i32, i32) {
    %c0_i32 = arith.constant 0 : i32
    %c0_i32_0 = arith.constant 0 : i32
    return %arg0, %arg1, %c0_i32 : i32, i32, i32
  }
}

</mosaic_0001>

<bundles_post_ra>
// kernel: tpu_custom_call.1
= control target key start
LH: loop header
LB: loop body
LE: loop exit
PB: predicated region body
PF: predicated region fallthrough
CT: control target
= control target key end

     0   :  { %s2580_s0 = inlined_call_operand.hbm [shape: bf16[2,48,128], index: 0, kind: input, shape index: {}]   ;;  %s2581_s1 = inlined_call_operand.hbm [shape: bf16[3,128,128], index: 1, kind: input, shape index: {}]   ;;  %s2582_s2 = inlined_call_operand.vmem [shape: f32[1,128], index: 2, kind: input, shape index: {}]   ;;  %s2583_s3 = inlined_call_operand.hbm [shape: bf16[3,128,128], index: 3, kind: input, shape index: {}]   ;;  %s2584_s4 = inlined_call_operand.vmem [shape: f32[1,128], index: 4, kind: input, shape index: {}]   ;;  %s2585_s5 = inlined_call_operand.hbm [shape: bf16[128,128], index: 5, kind: input, shape index: {}]   ;;  %s2586_s6 = inlined_call_operand.vmem [shape: f32[1,128], index: 6, kind: input, shape index: {}]   ;;  %s2587_s7 = inlined_call_operand.hbm [shape: bf16[2,48,128], index: 7, kind: output, shape index: {}]  }
   0x1   :  { %2597 = sst [smem:[#allocation20_spill]] %s2581_s1 }
   0x2   :  { %2598 = sst [smem:[#allocation21_spill]] %s2583_s3 }
   0x3   :  { %2599 = sst [smem:[#allocation22_spill]] %s2584_s4 }
   0x4   :  { %2600 = sst [smem:[#allocation23_spill]] %s2585_s5 }
   0x5   :  { %2601 = sst [smem:[#allocation24_spill]] %s2586_s6 }
   0x6   :  { %2602 = sst [smem:[#allocation25_spill]] %s2587_s7 }
   0x7   :  { %12 = vsyncpa [#allocation5], 0 }
   0x8   :  { %14 = vsyncpa [#allocation5 + $0x1], 0 }
   0x9   :  { %15 = vsyncpa [#allocation8], 0 }
   0xa   :  { %16 = vsyncpa [#allocation11], 0 }
   0xb   :  { %17 = vsyncpa [#allocation6], 0 }
   0xc   :  { %19 = vsyncpa [#allocation6 + $0x1], 0  ;;  %s2152_s24 = smov 0   ;;  %s2154_s25 = smov 0  }
   0xd   :  { %s2156_s26 = smov 0   ;;  %s2158_s27 = smov 0  }
   0xe   :  { %s2160_s28 = smov 0   ;;  %s2162_s29 = smov 0  }
   0xf   :  { %s2164_s30 = smov 0   ;;  %s2166_s8 = smov 0  }
  0x10 LB: > { %2603 = sst [smem:[#allocation17_spill]] %s2070_s24  ;;  %s1384_s9 = sadd.s32 4294967295, %s2098_s8   ;;  %s2098_s8 = sphi %s2166_s8, %s25_s8   ;;  %s2094_s30 = sphi %s2164_s30, %s2639_s30   ;;  %s2090_s29 = sphi %s2162_s29, %s2638_s29   ;;  %s2086_s28 = sphi %s2160_s28, %s2637_s28   ;;  %s2082_s27 = sphi %s2158_s27, %s2636_s27   ;;  %s2078_s26 = sphi %s2156_s26, %s2635_s26   ;;  %s2074_s25 = sphi %s2154_s25, %s2634_s25   ;;  %s2070_s24 = sphi %s2152_s24, %s2633_s24  }
  0x11   : > { %2604 = sst [smem:[#allocation18_spill]] %s2086_s28  ;;  %s1385_s10 = sadd.s32 4294967294, %s2098_s8  }
  0x12   : > { %p59_p0 = scmp.ne.s32.totalorder %s2074_s25, %s2070_s24  ;;  %p2196_p1 = scmp.eq.s32.totalorder %s1384_s9, 0 }
  0x13   : > { %p2200_p2 = scmp.eq.s32.totalorder %s1384_s9, 5  ;;  %p217_p3 = scmp.eq.s32.totalorder %s1385_s10, 5 }
  0x14   : > { %s2605_s11 = scalar_select %p2196_p1, 1, 0 }
  0x15   : > { %s2606_s12 = scalar_select %p2200_p2, 1, 0 }
  0x16   : > { %p2206_p4 = por %p2196_p1, %p59_p0  ;;  %p1386_p5 = scmp.ge.s32.totalorder %s2098_s8, 1 }
  0x17   : > { %p2211_p6 = por %p217_p3, %p59_p0  ;;  %p224_p7 = scmp.lt.s32.totalorder %s2098_s8, 7 }
  0x18   : > { %s2607_s13 = scalar_select %p2206_p4, 1, 0 }
  0x19   : > { %s2608_s14 = scalar_select %p2211_p6, 1, 0 }
  0x1a   : > { %p2216_p8 = pnand %p1386_p5, %p224_p7  ;;  %s2100_s16 = smov [#allocation7]  }
  0x1b   : > { %2609 = sst [smem:[#allocation19_spill]] %s2608_s14  ;;  %s236_s17 = sshll.u32 %s2100_s16, 4  ;;  %s2220_s17 = int_to_ptr.vmem [resolvable:$true] %s236_s17 }
  0x1c   : > { %s2610_s15 = scalar_select %p2216_p8, 1, 0 }
  0x1d   : > { %p1711_p9 = pneg %p2216_p8  ;;  %s2101_s19 = smov [#allocation9]  }
  0x1e   : > { %s252_s20 = sshll.u32 %s2101_s19, 4  ;;  %s2102_s21 = smov [#allocation10]   ;;  %s2230_s20 = int_to_ptr.vmem [resolvable:$true] %s252_s20 }
  0x1f   : > { %p2226_p10 = pnand %p1711_p9, %p2196_p1  ;;  %s2232_s22 = sshll.u32 %s2102_s21, 4  ;;  %s269_s22 = int_to_ptr.vmem [resolvable:$true] %s2232_s22 }
  0x20   : > { %s2612_s1 = sld [smem:[#allocation20_spill]] }
  0x21   : > { %p2242_p12 = pneg %p2226_p10 }
  0x26   : > { %s1878_s10 = scalar_lea.hbm %s2612_s1, 3072 }
  0x27   : > { %p1879_p11 = scmp.ne.s32.totalorder %s2612_s1, %s1878_s10  ;;  %p1885_p3 = scmp.lt.u32.totalorder %s1878_s10, %s2612_s1 }
  0x29   : > { %p1881_p13 = pnand %p2242_p12, %p1879_p11 }
  0x2b   : > { %p1882_p0 = pneg %p1881_p13 }
  0x2d   : > { %p1887_p5 = pnand %p1885_p3, %p1882_p0 }
  0x2f   : > { %1890 = shalt.err (!%p1887_p5)
}
  0x30   : > { %s1891_s14 = scalar_lea.vmem %s2220_s17, 3072  ;;  %p1899_p1 = scmp.lt.s32.totalorder %s2220_s17, %s2220_s17 }
  0x31   : > { %p1892_p7 = scmp.ne.s32.totalorder %s2220_s17, %s1891_s14  ;;  %p1900_p4 = scmp.lt.s32.totalorder %s1891_s14, %s1891_s14 }
  0x33   : > { %p1894_p9 = pnand %p1892_p7, %p2242_p12  ;;  %p1901_p11 = por %p1900_p4, %p1899_p1 }
  0x35   : > { %p1895_p6 = pneg %p1894_p9 }
  0x37   : > { %p1902_p13 = pnand %p1901_p11, %p1895_p6 }
  0x39   : > { %1905 = shalt.err (!%p1902_p13)
}
  0x3a   : > { %s2595_s23 = smov 64   ;;  %s2596_s9 = smov 4  }
  0x3b   : > { %1714 = dma.hbm_to_vmem [thread:$0]  (!%p2226_p10), %s2612_s1, 3072, %s2220_s17, [#allocation8], %s2595_s23, %s2595_s23, %s2596_s9  }
  0x3c   : > { %s2614_s3 = sld [smem:[#allocation21_spill]] }
  0x42   : > { %s1906_s14 = scalar_lea.hbm %s2614_s3, 3072 }
  0x43   : > { %p1907_p1 = scmp.ne.s32.totalorder %s2614_s3, %s1906_s14  ;;  %p1913_p0 = scmp.lt.u32.totalorder %s1906_s14, %s2614_s3 }
  0x45   : > { %p1909_p4 = pnand %p1907_p1, %p2242_p12 }
  0x47   : > { %p1910_p6 = pneg %p1909_p4 }
  0x49   : > { %p1915_p3 = pnand %p1913_p0, %p1910_p6 }
  0x4b   : > { %1918 = shalt.err (!%p1915_p3)
}
  0x4c   : > { %s1919_s17 = scalar_lea.vmem %s2230_s20, 3072  ;;  %p1927_p11 = scmp.lt.s32.totalorder %s2230_s20, %s2230_s20 }
  0x4d   : > { %p1920_p5 = scmp.ne.s32.totalorder %s2230_s20, %s1919_s17  ;;  %p1928_p13 = scmp.lt.s32.totalorder %s1919_s17, %s1919_s17 }
  0x4f   : > { %p1922_p7 = pnand %p1920_p5, %p2242_p12  ;;  %p1929_p1 = por %p1928_p13, %p1927_p11 }
  0x51   : > { %p1923_p9 = pneg %p1922_p7 }
  0x53   : > { %p1930_p4 = pnand %p1929_p1, %p1923_p9 }
  0x55   : > { %1933 = shalt.err (!%p1930_p4)
}
  0x56   : > { %1717 = dma.hbm_to_vmem [thread:$0]  (!%p2226_p10), %s2614_s3, 3072, %s2230_s20, [#allocation8], %s2595_s23, %s2595_s23, %s2596_s9  }
  0x57   : > { %s2615_s5 = sld [smem:[#allocation23_spill]] }
  0x5d   : > { %s1934_s10 = scalar_lea.hbm %s2615_s5, 1024 }
  0x5e   : > { %p1935_p6 = scmp.ne.s32.totalorder %s2615_s5, %s1934_s10  ;;  %p1941_p5 = scmp.lt.u32.totalorder %s1934_s10, %s2615_s5 }
  0x60   : > { %p1937_p0 = pnand %p1935_p6, %p2242_p12 }
  0x62   : > { %p1938_p3 = pneg %p1937_p0 }
  0x64   : > { %p1943_p7 = pnand %p1941_p5, %p1938_p3 }
  0x66   : > { %1946 = shalt.err (!%p1943_p7)
}
  0x67   : > { %s1947_s17 = scalar_lea.vmem %s269_s22, 1024  ;;  %p1955_p1 = scmp.lt.s32.totalorder %s269_s22, %s269_s22 }
  0x68   : > { %p1948_p9 = scmp.ne.s32.totalorder %s269_s22, %s1947_s17  ;;  %p1956_p4 = scmp.lt.s32.totalorder %s1947_s17, %s1947_s17 }
  0x6a   : > { %p1950_p11 = pnand %p1948_p9, %p2242_p12  ;;  %p1957_p8 = por %p1956_p4, %p1955_p1 }
  0x6c   : > { %p1951_p13 = pneg %p1950_p11 }
  0x6e   : > { %p1958_p2 = pnand %p1957_p8, %p1951_p13 }
  0x70   : > { %1961 = shalt.err (!%p1958_p2)
}
  0x71   : > { %1720 = dma.hbm_to_vmem [thread:$0]  (!%p2226_p10), %s2615_s5, 1024, %s269_s22, [#allocation11], %s2595_s23, %s2595_s23, %s2596_s9  }
  0x72   : > { %s34_s24 = sadd.s32 1, %s2090_s29  ;;  %s37_s18 = sadd.s32 1, %s2094_s30 }
  0x73   : > { %p35_p2 = scmp.ge.s32.totalorder %s34_s24, 3  ;;  %s46_s6 = sadd.s32 1, %s2078_s26 }
  0x74   : > { %p53_p8 = scmp.ne.s32.totalorder %s2078_s26, %s2074_s25  ;;  %p54_p12 = scmp.eq.s32.totalorder %s2098_s8, 0 }
  0x75   : > { %s2641_s24 = smov (%p35_p2, %s34_s24), 0  ;;  %s2643_s18 = smov (!%p35_p2, %s37_s18), %s2094_s30 }
  0x76   : > { %s42_s7 = ssub.s32 %s2090_s29, %s2641_s24  ;;  %p39_p6 = scmp.ge.s32.totalorder %s2643_s18, 2 }
  0x77   : > { %p2616_p0 = scmp.ne.s32.totalorder %s2606_s12, 0  ;;  %p2331_p10 = por %p54_p12, %p53_p8 }
  0x78   : > { %p1732_p5 = scmp.lt.s32.totalorder %s2098_s8, 6  ;;  %s2645_s18 = smov (%p39_p6, %s2643_s18), 0 }
  0x79   : > { %p2327_p3 = por %p2616_p0, %p53_p8  ;;  %s285_s10 = sand.u32 1, %s2078_s26  }
  0x7a   : > { %s1392_s16 = sshll.u32 %s2090_s29, 1  ;;  %s41_s19 = ssub.s32 %s2094_s30, %s2645_s18 }
  0x7b   : > { %s43_s21 = sor.u32 %s42_s7, %s41_s19  ;;  %s1391_s14 = sshll.u32 %s285_s10, 3 }
  0x7c   : > { %p44_p7 = scmp.eq.s32.totalorder %s43_s21, 0  ;;  %s1693_s12 = smul.u32 6, %s2094_s30 }
  0x7d   : > { %s289_s17 = scalar_lea.vmem [#allocation4], %s1391_s14  ;;  %p2352_p9 = pnand %p1732_p5, %p2331_p10 }
  0x7e   : > { %s298_s20 = sshll.u32 %s289_s17, 4  ;;  %s295_s23 = sadd.s32 %s1693_s12, %s1392_s16  ;;  %s2346_s20 = int_to_ptr.vmem [resolvable:$true] %s298_s20 }
  0x7f   : > { %s2344_s4 = scalar_select %p44_p7, %s2078_s26, %s46_s6  }
  0x80   : > { %s1393_s9 = sshll.u32 %s295_s23, 6  ;;  %s2361_s6 = scalar_lea.sflag [#allocation5], %s285_s10 }
  0x81   : > { %s2359_s7 = scalar_lea.hbm %s2580_s0, %s1393_s9  ;;  %p1964_p13 = pneg %p2352_p9 }
  0x82   : > { %s1962_s23 = scalar_lea.hbm %s2359_s7, 128  ;;  %s1967_s5 = scalar_lea.hbm %s2580_s0, 768 }
  0x83   : > { %p1963_p11 = scmp.ne.s32.totalorder %s2359_s7, %s1962_s23  ;;  %p1968_p2 = scmp.lt.u32.totalorder %s2359_s7, %s2580_s0 }
  0x84   : > { %p1969_p8 = scmp.lt.u32.totalorder %s1967_s5, %s1962_s23  ;;  %p1971_p6 = scmp.lt.u32.totalorder %s1962_s23, %s2359_s7 }
  0x85   : > { %p1965_p1 = pnand %p1964_p13, %p1963_p11 }
  0x86   : > { %p1970_p12 = por %p1969_p8, %p1968_p2 }
  0x87   : > { %p1966_p4 = pneg %p1965_p1 }
  0x88   : > { %p1972_p0 = por %p1971_p6, %p1970_p12 }
  0x8a   : > { %p1973_p10 = pnand %p1972_p0, %p1966_p4 }
  0x8c   : > { %1976 = shalt.err (!%p1973_p10)
}
  0x8d   : > { %s1977_s10 = scalar_lea.vmem %s2346_s20, 128  ;;  %s2105_s19 = smov [#allocation4]  }
  0x8e   : > { %p1978_p5 = scmp.ne.s32.totalorder %s2346_s20, %s1977_s10  ;;  %s1982_s21 = sshll.u32 %s2105_s19, 4  ;;  %s1983_s21 = int_to_ptr.vmem [resolvable:$false] %s1982_s21 }
  0x8f   : > { %s1984_s14 = scalar_lea.vmem %s1983_s21, 256  ;;  %p1985_p1 = scmp.lt.s32.totalorder %s2346_s20, %s1983_s21 }
  0x90   : > { %p1980_p7 = pnand %p1978_p5, %p1964_p13  ;;  %p1986_p2 = scmp.lt.s32.totalorder %s1984_s14, %s1977_s10 }
  0x92   : > { %p1981_p11 = pneg %p1980_p7  ;;  %p1987_p8 = por %p1986_p2, %p1985_p1 }
  0x94   : > { %p1988_p12 = pnand %p1987_p8, %p1981_p11 }
  0x96   : > { %1991 = shalt.err (!%p1988_p12)
}
  0x97   : > { %s2620_s12 = smov 4   ;;  %s2621_s17 = smov 64  }
  0x98   : > { %1724 = dma.hbm_to_vmem [thread:$0]  (!%p2352_p9), %s2359_s7, 128, %s2346_s20, %s2361_s6, %s2621_s17, %s2621_s17, %s2620_s12  }
  0x99   : > { %p2622_p13 = scmp.ne.s32.totalorder %s2610_s15, 0 }
  0x9a   : > { %s2395_s23 = sand.u32 (!%p2622_p13), 1, %s2074_s25   ;;  %p2623_p4 = scmp.ne.s32.totalorder (!%p2622_p13), %s2607_s13, 0 }
  0x9b   : > { %310 = sbr.rel (%p2622_p13) target bundleno = 761 (0x2f9), region = 48  ;;  %s1395_s22 = sshll.u32 (!%p2622_p13), %s2395_s23, 3 }
  0x9c   : > { %s313_s3 = scalar_lea.sflag (!%p2622_p13), [#allocation5], %s2395_s23  ;;  %s2399_s5 = scalar_lea.vmem (!%p2622_p13), [#allocation4], %s1395_s22 }
  0xa2   : > { %2053 = dma.done.wait (%p2623_p4), %s313_s3, 128  }
  0xa3   : > { %2055 = vsyncadd (%p2623_p4), %s313_s3, 4294967168  ;;  %p2624_p9 = scmp.ne.s32.totalorder %s2605_s11, 0 }
  0xa5   : > { %2057 = dma.done.wait (%p2624_p9), [#allocation8], 6144  }
  0xa6   : > { %2059 = vsyncadd (%p2624_p9), [#allocation8], 4294961152 }
  0xa7   : > { %2061 = dma.done.wait (%p2624_p9), [#allocation11], 1024  }
  0xa8   : > { %2063 = vsyncadd (%p2624_p9), [#allocation11], 4294966272  ;;  %s2413_s1 = scalar_lea.vmem [#allocation12], %s1395_s22  ;;  %p1400_p6 = scmp.ne.s32.totalorder %s2082_s27, 0 }
  0xa9   : > { %v2106_v0 = vmov (!%p1400_p6), 0  }
  0xaa   : > { %365 = sbr.rel (%p1400_p6) target bundleno = 177 (0xb1), region = 68  ;;  %366 = vst [vmem:[#allocation2] sm:$0xf] (!%p1400_p6), %v2106_v0  ;;  %367 = vst [vmem:[#allocation3] sm:$0xf] (!%p1400_p6), %v2106_v0 }
  0xb1 PF: > { %v1811_v1 = vld [vmem:[#allocation7 + $0x40] sm:$0xff]   ;;  %v2107_v2 = vmov 0.0   ;;  %v1813_v4 = vld [vmem:[#allocation7 + $0x48] sm:$0xff]   ;;  %vm2108_vm0 = vmmov 0   ;;  %v1815_v6 = vld [vmem:[#allocation7 + $0x50] sm:$0xff]   ;;  %vm418_vm1 = vcmask 1044480  }
  0xb2   : > { %1553 = vmatprep.subr.bf16.mxu0 %v2107_v2  ;;  %1573 = vmatprep.subr.bf16.mxu1 %v2107_v2  ;;  %v1812_v3 = vld [vmem:[#allocation7] sm:$0xff]   ;;  %v1814_v5 = vld [vmem:[#allocation7 + $0x8] sm:$0xff]   ;;  %v1816_v7 = vld [vmem:[#allocation7 + $0x10] sm:$0xff]   ;;  %vm518_vm2 = vcmask 1045504   ;;  %s1240_s15 = sadd.s32 1, %s2082_s27  ;;  %s2625_s6 = sld [smem:[#allocation22_spill]] }
  0xb3   : > { %1554 = vmatpush3.bf16.msra.mxu0 %v1811_v1  ;;  %1569 = vmatprep.mubr.msk.bf16.mxu0 %vm2108_vm0, %v2107_v2  ;;  %v1817_v8 = vld [vmem:[#allocation7 + $0x58] sm:$0xff]   ;;  %v1819_v10 = vld [vmem:[#allocation7 + $0x60] sm:$0xff]   ;;  %v1821_v14 = vld [vmem:[#allocation7 + $0x68] sm:$0xff]   ;;  %s2626_s10 = sld [smem:[#allocation24_spill]]  ;;  %p1475_p0 = scmp.ge.s32.totalorder %s1240_s15, 3 }
  0xb4   : > { %1574 = vmatpush3.bf16.msra.mxu1 %v1812_v3  ;;  %1555 = vmatprep.subr.bf16.mxu0 %v2107_v2  ;;  %v1818_v9 = vld [vmem:[#allocation7 + $0x18] sm:$0xff]   ;;  %v1820_v11 = vld [vmem:[#allocation7 + $0x20] sm:$0xff]   ;;  %v1822_v15 = vld [vmem:[#allocation7 + $0x28] sm:$0xff]  }
  0xb5   : > { %1575 = vmatprep.subr.bf16.mxu1 %v2107_v2  ;;  %1589 = vmatprep.mubr.msk.bf16.mxu1 %vm2108_vm0, %v2107_v2  ;;  %v2431_v12 = vld [vmem:[%s2399_s5] sm:$0xf]  ;;  %v2434_v13 = vld [vmem:[%s2399_s5 + $0x4] sm:$0xf]  ;;  %v1831_v31 = vld [vmem:[#allocation7 + $0x80] sm:$0xff]  }
  0xb6   : > { %370 = vst [vmem:[#allocation2 + $0x4] sm:$0xf] %v2431_v12  ;;  %371 = vst [vmem:[#allocation2 + $0x8] sm:$0xf] %v2434_v13  ;;  %v1823_v16 = vld [vmem:[#allocation7 + $0x70] sm:$0xff]   ;;  %v1825_v25 = vld [vmem:[#allocation7 + $0x78] sm:$0xff]  }
  0xb7   : > { %1556 = vmatpush3.bf16.msra.mxu0 %v1813_v4  ;;  %v391_v17 = vld [vmem:[#allocation2] sm:$0x8]  ;;  %v1824_v19 = vld [vmem:[#allocation7 + $0x30] sm:$0xff]   ;;  %v1832_v34 = vld [vmem:[#allocation7 + $0x88] sm:$0xff]  }
  0xb8   : > { %1576 = vmatpush3.bf16.msra.mxu1 %v1814_v5  ;;  %1557 = vmatprep.subr.bf16.mxu0 %v2107_v2  ;;  %v372_v18 = vld [vmem:[#allocation2] sm:$0xc]  ;;  %v1833_v35 = vld [vmem:[#allocation7 + $0x90] sm:$0xff]   ;;  %v1835_v37 = vld [vmem:[#allocation7 + $0xa0] sm:$0xff]  }
  0xb9   : > { %1577 = vmatprep.subr.bf16.mxu1 %v2107_v2  ;;  %v1826_v26 = vld [vmem:[#allocation7 + $0x38] sm:$0xff]   ;;  %v1836_v38 = vld [vmem:[#allocation7 + $0xa8] sm:$0xff]   ;;  %v1837_v39 = vld [vmem:[#allocation7 + $0xb0] sm:$0xff]  }
  0xba   : > { %v1834_v36 = vld [vmem:[#allocation7 + $0x98] sm:$0xff]   ;;  %v1840_v43 = vld [vmem:[#allocation9 + $0x40] sm:$0xff]   ;;  %v1842_v45 = vld [vmem:[#allocation9 + $0x48] sm:$0xff]  }
  0xbb   : > { %1558 = vmatpush3.bf16.msra.mxu0 %v1815_v6  ;;  %v1838_v40 = vld [vmem:[#allocation7 + $0xb8] sm:$0xff]   ;;  %v1841_v44 = vld [vmem:[#allocation9] sm:$0xff]   ;;  %v1843_v46 = vld [vmem:[#allocation9 + $0x8] sm:$0xff]  }
  0xbc   : > { %1578 = vmatpush3.bf16.msra.mxu1 %v1816_v7  ;;  %1559 = vmatprep.subr.bf16.mxu0 %v2107_v2  ;;  %v1844_v47 = vld [vmem:[#allocation9 + $0x50] sm:$0xff]   ;;  %v1846_v49 = vld [vmem:[#allocation9 + $0x58] sm:$0xff]   ;;  %v1848_v51 = vld [vmem:[#allocation9 + $0x60] sm:$0xff]  }
  0xbd   : > { %1579 = vmatprep.subr.bf16.mxu1 %v2107_v2  ;;  %v373_v20 = vld [vmem:[#allocation2 + $0x4] sm:$0xf]  ;;  %v1828_v22 = vld [vmem:[#allocation2 + $0x8] ss:$0 sps:$4 sm:$0x77]   ;;  %v1845_v48 = vld [vmem:[#allocation9 + $0x10] sm:$0xff]  }
  0xbe   : > { %v1401_v21 = vcombine.low %v391_v17, %v373_v20  ;;  %v1411_v23 = vcombine.low %v372_v18, %v373_v20  ;;  %v1830_v24 = vld [vmem:[#allocation2 + $0x8] ss:$0 sps:$4 sm:$0x33]   ;;  %v420_v28 = vrot.slane %v1828_v22, 3  ;;  %v1847_v50 = vld [vmem:[#allocation9 + $0x18] sm:$0xff]   ;;  %v1850_v53 = vld [vmem:[#allocation9 + $0x68] sm:$0xff]  }
  0xbf   : > { %1560 = vmatpush3.bf16.msra.mxu0 %v1817_v8  ;;  %v520_v30 = vrot.slane %v1830_v24, 2  ;;  %v612_v41 = vld [vmem:[#allocation2 + $0x8] sm:$0xf]  ;;  %v1851_v54 = vld [vmem:[#allocation9 + $0x28] sm:$0xff]   ;;  %v1852_v55 = vld [vmem:[#allocation9 + $0x70] sm:$0xff]  }
  0xc0   : > { %1580 = vmatpush3.bf16.msra.mxu1 %v1818_v9  ;;  %1561 = vmatprep.subr.bf16.mxu0 %v2107_v2  ;;  %v419_v27 = vrot.slane %v1401_v21, 3  ;;  %v519_v29 = vrot.slane %v1411_v23, 2  ;;  %v1421_v42 = vcombine.low %v373_v20, %v612_v41  ;;  %v1849_v52 = vld [vmem:[#allocation9 + $0x20] sm:$0xff]   ;;  %v1853_v56 = vld [vmem:[#allocation9 + $0x30] sm:$0xff]   ;;  %v1854_v57 = vld [vmem:[#allocation9 + $0x78] sm:$0xff]  }
  0xc1   : > { %1581 = vmatprep.subr.bf16.mxu1 %v2107_v2  ;;  %v1855_v58 = vld [vmem:[#allocation9 + $0x38] sm:$0xff]   ;;  %v765_v21 = vld [vmem:[#allocation3] sm:$0x8] }
  0xc2   : > { %v421_v32 = vsel %vm418_vm1, %v419_v27, %v420_v28  ;;  %v521_v33 = vsel %vm518_vm2, %v519_v29, %v520_v30  ;;  %v1430_v7 = vld [vmem:[%s2582_s2] ss:$0 sm:$0xff]  ;;  %v746_v22 = vld [vmem:[#allocation3] sm:$0xc] }
  0xc3   : > { %1562 = vmatpush3.bf16.msra.mxu0 %v1819_v10  ;;  %v1867_v41 = vld [vmem:[#allocation10 + $0x18] sm:$0xff]  }
  0xc4   : > { %1582 = vmatpush3.bf16.msra.mxu1 %v1820_v11  ;;  %1563 = vmatprep.subr.bf16.mxu0 %v2107_v2 }
  0xc5   : > { %1583 = vmatprep.subr.bf16.mxu1 %v2107_v2 }
  0xc7   : > { %1564 = vmatpush3.bf16.msra.mxu0 %v1821_v14 }
  0xc8   : > { %1584 = vmatpush3.bf16.msra.mxu1 %v1822_v15  ;;  %1565 = vmatprep.subr.bf16.mxu0 %v2107_v2 }
  0xc9   : > { %1585 = vmatprep.subr.bf16.mxu1 %v2107_v2 }
  0xcb   : > { %1566 = vmatpush3.bf16.msra.mxu0 %v1823_v16 }
  0xcc   : > { %1586 = vmatpush3.bf16.msra.mxu1 %v1824_v19  ;;  %1567 = vmatprep.subr.bf16.mxu0 %v2107_v2 }
  0xcd   : > { %1587 = vmatprep.subr.bf16.mxu1 %v2107_v2 }
  0xcf   : > { %1568 = vmatpush3.bf16.msra.mxu0 %v1825_v25 }
  0xd0   : > { %1588 = vmatpush3.bf16.msra.mxu1 %v1826_v26  ;;  %1593 = vmatprep.subr.bf16.mxu0 %v2107_v2 }
  0xd1   : > { %1613 = vmatprep.subr.bf16.mxu1 %v2107_v2 }
  0xd2   : > { %1570 = vmatmul.mubr.bf16.vlgmr.msra.gmra.mrb[0].mxu0 %v421_v32 }
  0xd3   : > { %1590 = vmatmul.mubr.bf16.vlgmr.msra.gmra.mrb[0].mxu1 %v521_v33  ;;  %1594 = vmatpush3.bf16.msra.mxu0 %v1831_v31  ;;  %v1860_v31 = vld [vmem:[#allocation9 + $0x80] sm:$0xff]  }
  0xd4   : > { %1595 = vmatprep.subr.bf16.mxu0 %v2107_v2  ;;  %1609 = vmatprep.mubr.msk.bf16.mxu0 %vm2108_vm0, %v2107_v2  ;;  %v1861_v33 = vld [vmem:[#allocation10] sm:$0xff]  }
  0xd5   : > { %1629 = vmatprep.mubr.msk.bf16.mxu1 %vm2108_vm0, %v2107_v2  ;;  %1614 = vmatpush3.bf16.msra.mxu1 %v1840_v43  ;;  %v1869_v43 = vld [vmem:[#allocation10 + $0x20] sm:$0xff]  }
  0xd6   : > { %1615 = vmatprep.subr.bf16.mxu1 %v2107_v2 }
  0xd7   : > { %1596 = vmatpush3.bf16.msra.mxu0 %v1832_v34 }
  0xd8   : > { %1597 = vmatprep.subr.bf16.mxu0 %v2107_v2 }
  0xd9   : > { %1616 = vmatpush3.bf16.msra.mxu1 %v1842_v45  ;;  %v1871_v45 = vld [vmem:[#allocation10 + $0x28] sm:$0xff]  }
  0xda   : > { %1617 = vmatprep.subr.bf16.mxu1 %v2107_v2 }
  0xdb   : > { %1598 = vmatpush3.bf16.msra.mxu0 %v1833_v35 }
  0xdc   : > { %1599 = vmatprep.subr.bf16.mxu0 %v2107_v2 }
  0xdd   : > { %1618 = vmatpush3.bf16.msra.mxu1 %v1844_v47  ;;  %v1873_v47 = vld [vmem:[#allocation10 + $0x30] sm:$0xff]  }
  0xde   : > { %1619 = vmatprep.subr.bf16.mxu1 %v2107_v2 }
  0xdf   : > { %1600 = vmatpush3.bf16.msra.mxu0 %v1834_v36  ;;  %v1862_v36 = vld [vmem:[#allocation9 + $0x88] sm:$0xff]  }
  0xe0   : > { %1601 = vmatprep.subr.bf16.mxu0 %v2107_v2 }
  0xe1   : > { %1620 = vmatpush3.bf16.msra.mxu1 %v1846_v49  ;;  %v1875_v49 = vld [vmem:[#allocation10 + $0x38] sm:$0xff]  }
  0xe2   : > { %1621 = vmatprep.subr.bf16.mxu1 %v2107_v2 }
  0xe3   : > { %1602 = vmatpush3.bf16.msra.mxu0 %v1835_v37  ;;  %v1863_v37 = vld [vmem:[#allocation10 + $0x8] sm:$0xff]  }
  0xe4   : > { %1603 = vmatprep.subr.bf16.mxu0 %v2107_v2 }
  0xe5   : > { %1622 = vmatpush3.bf16.msra.mxu1 %v1848_v51  ;;  %v1464_v51 = vcombine.low %v2431_v12, %v2434_v13  ;;  %v1462_v12 = vld [vmem:[%s2625_s6] ss:$0 sm:$0xff] }
  0xe6   : > { %1623 = vmatprep.subr.bf16.mxu1 %v2107_v2  ;;  %v1463_v13 = vld [vmem:[%s2626_s10] ss:$0 sm:$0xff] }
  0xe7   : > { %1604 = vmatpush3.bf16.msra.mxu0 %v1836_v38  ;;  %v1864_v38 = vld [vmem:[#allocation9 + $0x90] sm:$0xff]  }
  0xe8   : > { %1605 = vmatprep.subr.bf16.mxu0 %v2107_v2 }
  0xe9   : > { %1624 = vmatpush3.bf16.msra.mxu1 %v1850_v53 }
  0xea   : > { %1625 = vmatprep.subr.bf16.mxu1 %v2107_v2 }
  0xeb   : > { %1606 = vmatpush3.bf16.msra.mxu0 %v1837_v39  ;;  %v1865_v39 = vld [vmem:[#allocation10 + $0x10] sm:$0xff]  }
  0xec   : > { %1607 = vmatprep.subr.bf16.mxu0 %v2107_v2 }
  0xed   : > { %1626 = vmatpush3.bf16.msra.mxu1 %v1852_v55 }
  0xee   : > { %1627 = vmatprep.subr.bf16.mxu1 %v2107_v2 }
  0xef   : > { %1608 = vmatpush3.bf16.msra.mxu0 %v1838_v40  ;;  %v1866_v40 = vld [vmem:[#allocation9 + $0x98] sm:$0xff]  }
  0xf0   : > { %1633 = vmatprep.subr.bf16.mxu0 %v2107_v2 }
  0xf1   : > { %1628 = vmatpush3.bf16.msra.mxu1 %v1854_v57 }
  0xf2   : > { %1610 = vmatmul.mubr.bf16.vlgmr.msra.gmra.mrb[4].mxu0 %v1421_v42  ;;  %1653 = vmatprep.subr.bf16.mxu1 %v2107_v2  ;;  %v1868_v42 = vld [vmem:[#allocation9 + $0xa0] sm:$0xff]  }
  0xf3   : > { %1649 = vmatprep.mubr.msk.bf16.mxu0 %vm2108_vm0, %v2107_v2  ;;  %1634 = vmatpush3.bf16.msra.mxu0 %v1841_v44  ;;  %v1870_v44 = vld [vmem:[#allocation9 + $0xa8] sm:$0xff]  }
  0xf4   : > { %1635 = vmatprep.subr.bf16.mxu0 %v2107_v2 }
  0xf7   : > { %1636 = vmatpush3.bf16.msra.mxu0 %v1843_v46  ;;  %v1872_v46 = vld [vmem:[#allocation9 + $0xb0] sm:$0xff]  }
  0xf8   : > { %1637 = vmatprep.subr.bf16.mxu0 %v2107_v2 }
  0xfb   : > { %1638 = vmatpush3.bf16.msra.mxu0 %v1845_v48  ;;  %v1874_v48 = vld [vmem:[#allocation9 + $0xb8] sm:$0xff]  }
  0xfc   : > { %1639 = vmatprep.subr.bf16.mxu0 %v2107_v2 }
  0xff   : > { %1640 = vmatpush3.bf16.msra.mxu0 %v1847_v50 }
 0x100   : > { %1641 = vmatprep.subr.bf16.mxu0 %v2107_v2 }
 0x103   : > { %1642 = vmatpush3.bf16.msra.mxu0 %v1849_v52 }
 0x104   : > { %1643 = vmatprep.subr.bf16.mxu0 %v2107_v2 }
 0x107   : > { %1644 = vmatpush3.bf16.msra.mxu0 %v1851_v54 }
 0x108   : > { %1645 = vmatprep.subr.bf16.mxu0 %v2107_v2 }
 0x10b   : > { %1646 = vmatpush3.bf16.msra.mxu0 %v1853_v56 }
 0x10c   : > { %1647 = vmatprep.subr.bf16.mxu0 %v2107_v2 }
 0x10f   : > { %1648 = vmatpush3.bf16.msra.mxu0 %v1855_v58 }
 0x110   : > { %1673 = vmatprep.subr.bf16.mxu0 %v2107_v2 }
 0x1a5   : > { %v505_v59 = vpop.f32.mrb[0].mxu0 }
 0x1a6   : > { %v605_v60 = vpop.f32.mrb[0].mxu1  ;;  %v1571_v61 = vpop.f32.mrb[1].mxu0 }
 0x1a7   : > { %v606_v62 = vadd.f32 %v605_v60, %v505_v59  ;;  %v1591_v63 = vpop.f32.mrb[1].mxu1  ;;  %v508_v0 = vpop.f32.mrb[2].mxu0 }
 0x1a8   : > { %v608_v1 = vpop.f32.mrb[2].mxu1  ;;  %v1572_v3 = vpop.f32.mrb[3].mxu0 }
 0x1a9   : > { %v609_v4 = vadd.f32 %v608_v1, %v508_v0  ;;  %v1592_v5 = vpop.f32.mrb[3].mxu1 }
 0x1c5   : > { %v716_v6 = vpop.f32.mrb[4].mxu0 }
 0x1c6   : > { %v723_v8 = vadd.f32 %v716_v6, %v606_v62  ;;  %v1611_v9 = vpop.f32.mrb[5].mxu0 }
 0x1c7   : > { %v719_v10 = vpop.f32.mrb[6].mxu0 }
 0x1c8   : > { %v732_v11 = vadd.f32 %v1430_v7, %v723_v8  ;;  %v724_v14 = vadd.f32 %v719_v10, %v609_v4  ;;  %v1612_v15 = vpop.f32.mrb[7].mxu0 }
 0x1ca   : > { %v734_v16 = vmax.f32 %v732_v11, 0.0  ;;  %v733_v17 = vadd.f32 %v1430_v7, %v724_v14 }
 0x1cc   : > { %v1481_v18 = vpack.c.bf16 %v734_v16, %v734_v16  ;;  %v735_v19 = vmax.f32 %v733_v17, 0.0 }
 0x1ce   : > { %744 = vst [vmem:[#allocation3 + $0x4] sm:$0xf] %v1481_v18  ;;  %v1482_v20 = vpack.c.bf16 %v735_v19, %v735_v19 }
 0x1d0   : > { %745 = vst [vmem:[#allocation3 + $0x8] sm:$0xf] %v1482_v20 }
 0x1d5   : > { %v2481_v23 = vld [vmem:[#allocation3 + $0x4] sm:$0xf] }
 0x1d6   : > { %v1433_v24 = vcombine.low %v765_v21, %v2481_v23  ;;  %v1443_v25 = vcombine.low %v746_v22, %v2481_v23  ;;  %v1245_v22 = vld [vmem:[#allocation2 + $0x8] sm:$0xf] (!%p1475_p0) }
 0x1d7   : > { %v1857_v26 = vld [vmem:[#allocation3 + $0x8] ss:$0 sps:$4 sm:$0x77]   ;;  %1246 = vst [vmem:[#allocation2] sm:$0xf] (!%p1475_p0), %v1245_v22 }
 0x1d8   : > { %v792_v27 = vrot.slane %v1433_v24, 3  ;;  %v1859_v28 = vld [vmem:[#allocation3 + $0x8] ss:$0 sps:$4 sm:$0x33]   ;;  %v793_v29 = vrot.slane %v1857_v26, 3  ;;  %v891_v30 = vrot.slane %v1443_v25, 2 }
 0x1d9   : > { %v892_v32 = vrot.slane %v1859_v28, 2  ;;  %v984_v50 = vld [vmem:[#allocation3 + $0x8] sm:$0xf] }
 0x1da   : > { %v794_v34 = vsel %vm418_vm1, %v792_v27, %v793_v29  ;;  %v1453_v52 = vcombine.low %v2481_v23, %v984_v50  ;;  %v1247_v23 = vld [vmem:[#allocation3 + $0x8] sm:$0xf] (!%p1475_p0) }
 0x1db   : > { %1630 = vmatmul.mubr.bf16.vlgmr.msra.gmra.mrb[4].mxu1 %v794_v34  ;;  %v893_v35 = vsel %vm518_vm2, %v891_v30, %v892_v32  ;;  %1248 = vst [vmem:[#allocation3] sm:$0xf] (!%p1475_p0), %v1247_v23 }
 0x1dc   : > { %1650 = vmatmul.mubr.bf16.vlgmr.msra.gmra.mrb[8].mxu0 %v893_v35  ;;  %1654 = vmatpush3.bf16.msra.mxu1 %v1860_v31 }
 0x1dd   : > { %1674 = vmatpush3.bf16.msra.mxu0 %v1861_v33  ;;  %1655 = vmatprep.subr.bf16.mxu1 %v2107_v2 }
 0x1de   : > { %1675 = vmatprep.subr.bf16.mxu0 %v2107_v2  ;;  %1669 = vmatprep.mubr.msk.bf16.mxu1 %vm2108_vm0, %v2107_v2 }
 0x1df   : > { %1689 = vmatprep.mubr.msk.bf16.mxu0 %vm2108_vm0, %v2107_v2 }
 0x1e0   : > { %1656 = vmatpush3.bf16.msra.mxu1 %v1862_v36 }
 0x1e1   : > { %1676 = vmatpush3.bf16.msra.mxu0 %v1863_v37  ;;  %1657 = vmatprep.subr.bf16.mxu1 %v2107_v2 }
 0x1e2   : > { %1677 = vmatprep.subr.bf16.mxu0 %v2107_v2 }
 0x1e4   : > { %1658 = vmatpush3.bf16.msra.mxu1 %v1864_v38 }
 0x1e5   : > { %1678 = vmatpush3.bf16.msra.mxu0 %v1865_v39  ;;  %1659 = vmatprep.subr.bf16.mxu1 %v2107_v2 }
 0x1e6   : > { %1679 = vmatprep.subr.bf16.mxu0 %v2107_v2 }
 0x1e8   : > { %1660 = vmatpush3.bf16.msra.mxu1 %v1866_v40 }
 0x1e9   : > { %1680 = vmatpush3.bf16.msra.mxu0 %v1867_v41  ;;  %1661 = vmatprep.subr.bf16.mxu1 %v2107_v2 }
 0x1ea   : > { %1681 = vmatprep.subr.bf16.mxu0 %v2107_v2 }
 0x1ec   : > { %1662 = vmatpush3.bf16.msra.mxu1 %v1868_v42 }
 0x1ed   : > { %1682 = vmatpush3.bf16.msra.mxu0 %v1869_v43  ;;  %1663 = vmatprep.subr.bf16.mxu1 %v2107_v2 }
 0x1ee   : > { %1683 = vmatprep.subr.bf16.mxu0 %v2107_v2 }
 0x1f0   : > { %1664 = vmatpush3.bf16.msra.mxu1 %v1870_v44 }
 0x1f1   : > { %1684 = vmatpush3.bf16.msra.mxu0 %v1871_v45  ;;  %1665 = vmatprep.subr.bf16.mxu1 %v2107_v2 }
 0x1f2   : > { %1685 = vmatprep.subr.bf16.mxu0 %v2107_v2 }
 0x1f4   : > { %1666 = vmatpush3.bf16.msra.mxu1 %v1872_v46 }
 0x1f5   : > { %1686 = vmatpush3.bf16.msra.mxu0 %v1873_v47  ;;  %1667 = vmatprep.subr.bf16.mxu1 %v2107_v2 }
 0x1f6   : > { %1687 = vmatprep.subr.bf16.mxu0 %v2107_v2 }
 0x1f8   : > { %1668 = vmatpush3.bf16.msra.mxu1 %v1874_v48 }
 0x1f9   : > { %1688 = vmatpush3.bf16.msra.mxu0 %v1875_v49 }
 0x1fb   : > { %1670 = vmatmul.mubr.bf16.vlgmr.msra.gmra.mrb[8].mxu1 %v1453_v52 }
 0x1fc   : > { %1690 = vmatmul.mubr.bf16.vlgmr.msra.gmra.mrb[12].mxu0 %v1464_v51 }
 0x2ae   : > { %v878_v53 = vpop.f32.mrb[4].mxu1 }
 0x2af   : > { %v977_v54 = vpop.f32.mrb[8].mxu0  ;;  %v1631_v55 = vpop.f32.mrb[5].mxu1 }
 0x2b0   : > { %v978_v56 = vadd.f32 %v977_v54, %v878_v53  ;;  %v1651_v57 = vpop.f32.mrb[9].mxu0  ;;  %v881_v58 = vpop.f32.mrb[6].mxu1 }
 0x2b1   : > { %v980_v59 = vpop.f32.mrb[10].mxu0  ;;  %v1632_v60 = vpop.f32.mrb[7].mxu1 }
 0x2b2   : > { %v981_v2 = vadd.f32 %v980_v59, %v881_v58  ;;  %v1652_v61 = vpop.f32.mrb[11].mxu0 }
 0x2ce   : > { %v1088_v62 = vpop.f32.mrb[8].mxu1 }
 0x2cf   : > { %v1095_v63 = vadd.f32 %v1088_v62, %v978_v56  ;;  %v1671_v0 = vpop.f32.mrb[9].mxu1  ;;  %v1219_v1 = vpop.f32.mrb[12].mxu0 }
 0x2d0   : > { %v1091_v3 = vpop.f32.mrb[10].mxu1  ;;  %v1691_v4 = vpop.f32.mrb[13].mxu0  ;;  %v1220_v6 = vadd.f32 %v1463_v13, %v1219_v1 }
 0x2d1   : > { %v1104_v5 = vadd.f32 %v1462_v12, %v1095_v63  ;;  %v1096_v7 = vadd.f32 %v1091_v3, %v981_v2  ;;  %v1672_v8 = vpop.f32.mrb[11].mxu1  ;;  %v1222_v9 = vpop.f32.mrb[14].mxu0 }
 0x2d2   : > { %v1692_v10 = vpop.f32.mrb[15].mxu0  ;;  %v1223_v17 = vadd.f32 %v1463_v13, %v1222_v9 }
 0x2d3   : > { %v1106_v11 = vmax.f32 %v1104_v5, 0.0  ;;  %v1105_v14 = vadd.f32 %v1462_v12, %v1096_v7 }
 0x2d5   : > { %v1226_v15 = vadd.f32 %v1220_v6, %v1106_v11  ;;  %v1107_v16 = vmax.f32 %v1105_v14, 0.0 }
 0x2d7   : > { %v1227_v18 = vadd.f32 %v1223_v17, %v1107_v16  ;;  %v1228_v19 = vmax.f32 %v1226_v15, 0.0  ;;  %1244 = sbr.rel (%p1475_p0) target bundleno = 734 (0x2de), region = 72 }
 0x2d9   : > { %v1229_v20 = vmax.f32 %v1227_v18, 0.0 }
 0x2db   : > { %v1488_v21 = vpack.c.bf16 %v1229_v20, %v1228_v19 }
 0x2dd   : > { %1489 = vst [vmem:[%s2413_s1] sm:$0xff] %v1488_v21  }
 0x2de PF: > { %s2627_s19 = sld [smem:[#allocation18_spill]]  ;;  %s1477_s21 = sshll.u32 %s2082_s27, 1 }
 0x2df   : > { %s1265_s12 = sshll.u32 %s2413_s1, 4  ;;  %s2628_s11 = sld [smem:[#allocation25_spill]]  ;;  %s2521_s12 = int_to_ptr.vmem [resolvable:$true] %s1265_s12 }
 0x2e0   : > { %s1250_s15 = scalar_lea.sflag [#allocation6], %s2395_s23  ;;  %s1992_s20 = scalar_lea.vmem %s2521_s12, 128 }
 0x2e1   : > { %p1993_p10 = scmp.ne.s32.totalorder %s2521_s12, %s1992_s20  ;;  %s2109_s27 = smov [#allocation12]  }
 0x2e2   : > { %s1996_s1 = sshll.u32 %s2109_s27, 4  ;;  %s1997_s1 = int_to_ptr.vmem [resolvable:$false] %s1996_s1 }
 0x2e3   : > { %p1994_p5 = pnand %p1993_p10, %p2327_p3  ;;  %s1998_s7 = scalar_lea.vmem %s1997_s1, 256 }
 0x2e4   : > { %s1694_s14 = smul.u32 6, %s2627_s19  ;;  %p1999_p11 = scmp.lt.s32.totalorder %s2521_s12, %s1997_s1 }
 0x2e5   : > { %p1995_p7 = pneg %p1994_p5  ;;  %p2000_p1 = scmp.lt.s32.totalorder %s1998_s7, %s1992_s20 }
 0x2e6   : > { %s1262_s17 = sadd.s32 %s1694_s14, %s1477_s21 }
 0x2e7   : > { %s1478_s22 = sshll.u32 %s1262_s17, 6  ;;  %p2001_p2 = por %p2000_p1, %p1999_p11 }
 0x2e8   : > { %s2526_s13 = scalar_lea.hbm %s2628_s11, %s1478_s22 }
 0x2e9   : > { %p2002_p8 = pnand %p2001_p2, %p1995_p7 }
 0x2eb   : > { %2005 = shalt.err (!%p2002_p8)
}
 0x2ec   : > { %s2006_s6 = scalar_lea.hbm %s2526_s13, 128  ;;  %s2010_s10 = scalar_lea.hbm %s2628_s11, 768 }
 0x2ed   : > { %p2007_p12 = scmp.ne.s32.totalorder %s2526_s13, %s2006_s6  ;;  %p2011_p9 = scmp.lt.u32.totalorder %s2526_s13, %s2628_s11 }
 0x2ee   : > { %p2012_p6 = scmp.lt.u32.totalorder %s2010_s10, %s2006_s6  ;;  %p2014_p10 = scmp.lt.u32.totalorder %s2006_s6, %s2526_s13 }
 0x2ef   : > { %p2008_p13 = pnand %p2007_p12, %p2327_p3 }
 0x2f0   : > { %p2013_p0 = por %p2012_p6, %p2011_p9 }
 0x2f1   : > { %p2009_p4 = pneg %p2008_p13 }
 0x2f2   : > { %p2015_p5 = por %p2014_p10, %p2013_p0 }
 0x2f4   : > { %p2016_p7 = pnand %p2015_p5, %p2009_p4 }
 0x2f6   : > { %2019 = shalt.err (!%p2016_p7)
}
 0x2f7   : > { %s2110_s14 = smov 64   ;;  %s2111_s17 = smov 4  }
 0x2f8   : > { %1709 = dma.vmem_to_hbm [thread:$0]  (%p2327_p3), %s2521_s12, 128, %s2526_s13, %s1250_s15, %s2110_s14, %s2110_s14, %s2111_s17  }
 0x2f9 PF: > { %s2629_s22 = sld [smem:[#allocation17_spill]]  ;;  %s2630_s3 = sld [smem:[#allocation19_spill]] }
 0x2fa   : > { %p1736_p11 = scmp.ge.s32.totalorder %s2098_s8, 2 }
 0x2ff   : > { %s1280_s5 = sand.u32 1, %s2629_s22   ;;  %p2631_p1 = scmp.ne.s32.totalorder %s2630_s3, 0 }
 0x300   : > { %s1281_s20 = scalar_lea.sflag [#allocation6], %s1280_s5 }
 0x301   : > { %p1726_p2 = pnand %p1736_p11, %p2631_p1 }
 0x303   : > { %2065 = dma.done.wait (!%p1726_p2), %s1281_s20, 128  }
 0x304   : > { %2067 = vsyncadd (!%p1726_p2), %s1281_s20, 4294967168  ;;  %s25_s8 = sadd.s32 1, %s2098_s8   ;;  %s2632_s23 = smov %s2641_s24 }
 0x305   : > { %p22_p8 = scmp.ge.s32.totalorder %s25_s8, 8   ;;  %s2633_s24 = smov %s2074_s25 }
 0x306   : > { %s2634_s25 = smov %s2078_s26  ;;  %s2635_s26 = smov %s2344_s4 }
 0x307   : > { %s2636_s27 = smov %s2090_s29  ;;  %s2637_s28 = smov %s2094_s30 }
 0x308   : > { %s2638_s29 = smov %s2632_s23  ;;  %s2639_s30 = smov %s2645_s18 }
 0x309   :  { %24 = sbr.rel (!%p22_p8) target bundleno = 16 (0x10), region = 117 }
 0x310   :  { %1286 = vsyncpa [#allocation5], 1 }
 0x311   :  { %1288 = vsyncpa [#allocation5 + $0x1], 1 }
 0x312   :  { %1289 = vsyncpa [#allocation8], 1 }
 0x313   :  { %1290 = vsyncpa [#allocation11], 1 }
 0x314   :  { %1291 = vsyncpa [#allocation6], 1 }
 0x315   :  { %1293 = vsyncpa [#allocation6 + $0x1], 1 }

</bundles_post_ra>
